<compile_context>
chip_gen: v7x
topology: tpu7x:2x2x1
jax: 0.10.0
libtpu: 0.0.40
codegen_flags: <defaults>
</compile_context>

<pallas_src>
import functools

import jax
import jax.numpy as jnp
from jax.experimental import pallas as pl
from jax.experimental.pallas import tpu as pltpu

# ----------------------------------------------------------------------------
# Sizes
# ----------------------------------------------------------------------------
D_X, D_U = 13, 4
D_IN, D_H1, D_H2, D_OUT = 17, 64, 32, 13
D_OUT_PAD = 16  # lane-padded output width written by the kernel


# ----------------------------------------------------------------------------
# Kernel
# ----------------------------------------------------------------------------
def _delta_nn_kernel(z_ref, w1_ref, b1_ref, w2_ref, b2_ref, w3_ref, b3_ref,
                     o_ref):
    # z_ref : [TM, 17]   streamed input rows (x | u)
    # w1_ref: [17, 64], b1_ref: [1, 64]   (resident, DMAed once)
    # w2_ref: [64, 32], b2_ref: [1, 32]
    # w3_ref: [32, 16], b3_ref: [1, 16]   (cols 13:16 are zero)
    # o_ref : [TM, 16]   lanes 0:13 valid, 13:16 exactly 0
    z = z_ref[...]
    h1 = jnp.tanh(
        jnp.dot(z, w1_ref[...], preferred_element_type=jnp.float32)
        + b1_ref[...])
    h2 = jnp.tanh(
        jnp.dot(h1, w2_ref[...], preferred_element_type=jnp.float32)
        + b2_ref[...])
    o_ref[...] = (
        jnp.dot(h2, w3_ref[...], preferred_element_type=jnp.float32)
        + b3_ref[...])


# ----------------------------------------------------------------------------
# Host-side parameter prep (do once)
# ----------------------------------------------------------------------------
def prepare_params(params):
    """Reshape/pad raw (w1,b1,w2,b2,w3,b3) for the kernel.

    Returns f32 (w1[17,64], b1[1,64], w2[64,32], b2[1,32], w3p[32,16],
    b3p[1,16]); w3/b3 are zero-padded from 13 to 16 output lanes so pad lanes
    of the kernel output are exactly 0.
    """
    w1, b1, w2, b2, w3, b3 = (jnp.asarray(p, jnp.float32) for p in params)
    w3p = jnp.zeros((D_H2, D_OUT_PAD), jnp.float32).at[:, :D_OUT].set(w3)
    b3p = jnp.zeros((1, D_OUT_PAD), jnp.float32).at[:, :D_OUT].set(
        b3.reshape(1, D_OUT))
    return (w1, b1.reshape(1, D_H1), w2, b2.reshape(1, D_H2), w3p, b3p)


def _round_up(x, m):
    return (x + m - 1) // m * m


# ----------------------------------------------------------------------------
# Forward passes
# ----------------------------------------------------------------------------
@functools.partial(jax.jit, static_argnames=("tile_m",))
def delta_nn_forward_batched(xs, us, params, *, tile_m=None):
    """xs:[N,13], us:[N,4], params from prepare_params() -> out:[N,13]."""
    w1, b1, w2, b2, w3p, b3p = params
    n = xs.shape[0]
    if tile_m is None:
        # Large tiles to amortize per-step pipeline overhead, but keep >= 2
        # grid steps so ("parallel",) can shard across v7x's two TensorCores.
        tile_m = min(512, max(8, _round_up(pl.cdiv(n, 2), 8)))
    n_pad = _round_up(n, tile_m)

    # The concat is required by the spec; keep it narrow ([N,17]) and pad only
    # the row dimension up to the tile boundary.
    z = jnp.concatenate([xs.astype(jnp.float32), us.astype(jnp.float32)],
                        axis=-1)
    if n_pad != n:
        z = jnp.pad(z, ((0, n_pad - n), (0, 0)))

    const = lambda i: (0, 0)  # resident params: constant block index
    out = pl.pallas_call(
        _delta_nn_kernel,
        out_shape=jax.ShapeDtypeStruct((n_pad, D_OUT_PAD), jnp.float32),
        grid_spec=pltpu.PrefetchScalarGridSpec(
            num_scalar_prefetch=0,
            grid=(n_pad // tile_m,),
            in_specs=[
                # streamed per-tile input rows (last dim == full dim -> one
                # contiguous DMA chunk per tile)
                pl.BlockSpec((tile_m, D_IN), lambda i: (i, 0)),
                # resident parameters (full-array blocks, constant index_map)
                pl.BlockSpec((D_IN, D_H1), const),
                pl.BlockSpec((1, D_H1), const),
                pl.BlockSpec((D_H1, D_H2), const),
                pl.BlockSpec((1, D_H2), const),
                pl.BlockSpec((D_H2, D_OUT_PAD), const),
                pl.BlockSpec((1, D_OUT_PAD), const),
            ],
            out_specs=pl.BlockSpec((tile_m, D_OUT_PAD), lambda i: (i, 0)),
        ),
        compiler_params=pltpu.CompilerParams(
            dimension_semantics=("parallel",),
        ),
        cost_estimate=pl.CostEstimate(
            flops=2 * n_pad * (D_IN * D_H1 + D_H1 * D_H2 + D_H2 * D_OUT_PAD),
            transcendentals=n_pad * (D_H1 + D_H2),
            bytes_accessed=4 * (n_pad * (D_IN + D_OUT_PAD)
                                + D_IN * D_H1 + D_H1 * D_H2
                                + D_H2 * D_OUT_PAD
                                + D_H1 + D_H2 + D_OUT_PAD),
        ),
    )(z, w1, b1, w2, b2, w3p, b3p)
    return out[:n, :D_OUT]


def delta_nn_forward(x, u, params):
    """Single-vector API matching the nn.Module: x:[13], u:[4] -> [13].

    A single row is dispatch/DMA-overhead bound by nature; batch the rollout
    with delta_nn_forward_batched whenever possible.
    """
    return delta_nn_forward_batched(x[None, :], u[None, :], params)[0]


# ----------------------------------------------------------------------------
# Params + plain-JAX reference
# ----------------------------------------------------------------------------
def init_params(key):
    """PyTorch nn.Linear-style init (uniform +-1/sqrt(fan_in)); weights [in,out]."""
    dims = [(D_IN, D_H1), (D_H1, D_H2), (D_H2, D_OUT)]
    params = []
    for fan_in, fan_out in dims:
        key, kw, kb = jax.random.split(key, 3)
        bound = 1.0 / jnp.sqrt(float(fan_in))
        w = jax.random.uniform(kw, (fan_in, fan_out), jnp.float32, -bound, bound)
        b = jax.random.uniform(kb, (fan_out,), jnp.float32, -bound, bound)
        params += [w, b]
    return tuple(params)


def delta_nn_reference(xs, us, params):
    """Pure-JAX reference (batched): xs:[N,13], us:[N,4] -> [N,13]."""
    w1, b1, w2, b2, w3, b3 = params
    z = jnp.concatenate([xs, us], axis=-1).astype(jnp.float32)
    h1 = jnp.tanh(z @ w1 + b1)
    h2 = jnp.tanh(h1 @ w2 + b2)
    return h2 @ w3 + b3


# ----------------------------------------------------------------------------
# Demo / correctness check
# ----------------------------------------------------------------------------
if __name__ == "__main__":
    key = jax.random.PRNGKey(0)
    kp, kx, ku, kx1, ku1 = jax.random.split(key, 5)

    params = init_params(kp)
    prepped = jax.block_until_ready(prepare_params(params))  # packed once

    # Batched / rollout-style call: one kernel launch for N rows.
    N = 256
    xs = jax.random.normal(kx, (N, D_X), jnp.float32)
    us = jax.random.normal(ku, (N, D_U), jnp.float32)
    out_b = jax.block_until_ready(delta_nn_forward_batched(xs, us, prepped))
    ref_b = delta_nn_reference(xs, us, params)
    assert out_b.shape == (N, D_OUT)
    assert jnp.allclose(out_b, ref_b, atol=1e-5, rtol=1e-5)

    # Single (x, u) call matching the PyTorch forward signature.
    x = jax.random.normal(kx1, (D_X,), jnp.float32)
    u = jax.random.normal(ku1, (D_U,), jnp.float32)
    out1 = jax.block_until_ready(delta_nn_forward(x, u, prepped))
    ref1 = delta_nn_reference(x[None, :], u[None, :], params)[0]
    assert out1.shape == (D_OUT,)
    assert jnp.allclose(out1, ref1, atol=1e-5, rtol=1e-5)

    print("KERNEL_OK")
</pallas_src>

<mosaic_0001>
module attributes {stable_mosaic.version = 11 : i64} {
  func.func @_delta_nn_kernel(%arg0: i32, %arg1: memref<128x17xf32, #tpu.memory_space<vmem>>, %arg2: memref<17x64xf32, #tpu.memory_space<vmem>>, %arg3: memref<1x64xf32, #tpu.memory_space<vmem>>, %arg4: memref<64x32xf32, #tpu.memory_space<vmem>>, %arg5: memref<1x32xf32, #tpu.memory_space<vmem>>, %arg6: memref<32x16xf32, #tpu.memory_space<vmem>>, %arg7: memref<1x16xf32, #tpu.memory_space<vmem>>, %arg8: memref<128x16xf32, #tpu.memory_space<vmem>>) attributes {dimension_semantics = [#tpu.dimension_semantics<parallel>], iteration_bounds = array<i64: 2>, scalar_prefetch = 0 : i64, scratch_operands = 0 : i64, tpu.core_type = #tpu.core_type<tc>, window_params = [{transform_indices = @transform_0, window_bounds = array<i64: 128, 17>}, {pipeline_mode = #tpu.pipeline_mode<synchronous>, transform_indices = @transform_1, window_bounds = array<i64: 17, 64>}, {pipeline_mode = #tpu.pipeline_mode<synchronous>, transform_indices = @transform_2, window_bounds = array<i64: 1, 64>}, {pipeline_mode = #tpu.pipeline_mode<synchronous>, transform_indices = @transform_3, window_bounds = array<i64: 64, 32>}, {pipeline_mode = #tpu.pipeline_mode<synchronous>, transform_indices = @transform_4, window_bounds = array<i64: 1, 32>}, {pipeline_mode = #tpu.pipeline_mode<synchronous>, transform_indices = @transform_5, window_bounds = array<i64: 32, 16>}, {pipeline_mode = #tpu.pipeline_mode<synchronous>, transform_indices = @transform_6, window_bounds = array<i64: 1, 16>}, {transform_indices = @transform_7, window_bounds = array<i64: 128, 16>}]} {
    %c0 = arith.constant 0 : index
    %c0_0 = arith.constant 0 : index
    %0 = vector.load %arg1[%c0, %c0_0] : memref<128x17xf32, #tpu.memory_space<vmem>>, vector<128x17xf32>
    %c0_1 = arith.constant 0 : index
    %c0_2 = arith.constant 0 : index
    %1 = vector.load %arg2[%c0_1, %c0_2] : memref<17x64xf32, #tpu.memory_space<vmem>>, vector<17x64xf32>
    %cst = arith.constant dense<0.000000e+00> : vector<128x64xf32>
    %2 = tpu.matmul %0, %1, %cst {dimension_numbers = #tpu.dot_dimension_numbers<[1], [0], [0], [1], [0, 0, 1, 1], [], []>} : vector<128x17xf32>, vector<17x64xf32>, vector<128x64xf32> -> vector<128x64xf32>
    %c0_3 = arith.constant 0 : index
    %c0_4 = arith.constant 0 : index
    %3 = vector.load %arg3[%c0_3, %c0_4] : memref<1x64xf32, #tpu.memory_space<vmem>>, vector<1x64xf32>
    %4 = vector.broadcast %3 : vector<1x64xf32> to vector<128x64xf32>
    %5 = arith.addf %2, %4 : vector<128x64xf32>
    %6 = math.tanh %5 : vector<128x64xf32>
    %c0_5 = arith.constant 0 : index
    %c0_6 = arith.constant 0 : index
    %7 = vector.load %arg4[%c0_5, %c0_6] : memref<64x32xf32, #tpu.memory_space<vmem>>, vector<64x32xf32>
    %cst_7 = arith.constant dense<0.000000e+00> : vector<128x32xf32>
    %8 = tpu.matmul %6, %7, %cst_7 {dimension_numbers = #tpu.dot_dimension_numbers<[1], [0], [0], [1], [0, 0, 1, 1], [], []>} : vector<128x64xf32>, vector<64x32xf32>, vector<128x32xf32> -> vector<128x32xf32>
    %c0_8 = arith.constant 0 : index
    %c0_9 = arith.constant 0 : index
    %9 = vector.load %arg5[%c0_8, %c0_9] : memref<1x32xf32, #tpu.memory_space<vmem>>, vector<1x32xf32>
    %10 = vector.broadcast %9 : vector<1x32xf32> to vector<128x32xf32>
    %11 = arith.addf %8, %10 : vector<128x32xf32>
    %12 = math.tanh %11 : vector<128x32xf32>
    %c0_10 = arith.constant 0 : index
    %c0_11 = arith.constant 0 : index
    %13 = vector.load %arg6[%c0_10, %c0_11] : memref<32x16xf32, #tpu.memory_space<vmem>>, vector<32x16xf32>
    %cst_12 = arith.constant dense<0.000000e+00> : vector<128x16xf32>
    %14 = tpu.matmul %12, %13, %cst_12 {dimension_numbers = #tpu.dot_dimension_numbers<[1], [0], [0], [1], [0, 0, 1, 1], [], []>} : vector<128x32xf32>, vector<32x16xf32>, vector<128x16xf32> -> vector<128x16xf32>
    %c0_13 = arith.constant 0 : index
    %c0_14 = arith.constant 0 : index
    %15 = vector.load %arg7[%c0_13, %c0_14] : memref<1x16xf32, #tpu.memory_space<vmem>>, vector<1x16xf32>
    %16 = vector.broadcast %15 : vector<1x16xf32> to vector<128x16xf32>
    %17 = arith.addf %14, %16 : vector<128x16xf32>
    %c0_15 = arith.constant 0 : index
    %c0_16 = arith.constant 0 : index
    %18 = vector.load %arg8[%c0_15, %c0_16] : memref<128x16xf32, #tpu.memory_space<vmem>>, vector<128x16xf32>
    tpu.vector_store %arg8[%c0_15, %c0_16], %17 {strides = array<i32>} : memref<128x16xf32, #tpu.memory_space<vmem>>, vector<128x16xf32>,
    return
  }
  func.func @transform_0(%arg0: i32) -> (i32, i32) {
    %c0_i32 = arith.constant 0 : i32
    %c0_i32_0 = arith.constant 0 : i32
    return %arg0, %c0_i32 : i32, i32
  }
  func.func @transform_1(%arg0: i32) -> (i32, i32) {
    %c0_i32 = arith.constant 0 : i32
    %c0_i32_0 = arith.constant 0 : i32
    %c0_i32_1 = arith.constant 0 : i32
    return %c0_i32, %c0_i32_0 : i32, i32
  }
  func.func @transform_2(%arg0: i32) -> (i32, i32) {
    %c0_i32 = arith.constant 0 : i32
    %c0_i32_0 = arith.constant 0 : i32
    %c0_i32_1 = arith.constant 0 : i32
    return %c0_i32, %c0_i32_0 : i32, i32
  }
  func.func @transform_3(%arg0: i32) -> (i32, i32) {
    %c0_i32 = arith.constant 0 : i32
    %c0_i32_0 = arith.constant 0 : i32
    %c0_i32_1 = arith.constant 0 : i32
    return %c0_i32, %c0_i32_0 : i32, i32
  }
  func.func @transform_4(%arg0: i32) -> (i32, i32) {
    %c0_i32 = arith.constant 0 : i32
    %c0_i32_0 = arith.constant 0 : i32
    %c0_i32_1 = arith.constant 0 : i32
    return %c0_i32, %c0_i32_0 : i32, i32
  }
  func.func @transform_5(%arg0: i32) -> (i32, i32) {
    %c0_i32 = arith.constant 0 : i32
    %c0_i32_0 = arith.constant 0 : i32
    %c0_i32_1 = arith.constant 0 : i32
    return %c0_i32, %c0_i32_0 : i32, i32
  }
  func.func @transform_6(%arg0: i32) -> (i32, i32) {
    %c0_i32 = arith.constant 0 : i32
    %c0_i32_0 = arith.constant 0 : i32
    %c0_i32_1 = arith.constant 0 : i32
    return %c0_i32, %c0_i32_0 : i32, i32
  }
  func.func @transform_7(%arg0: i32) -> (i32, i32) {
    %c0_i32 = arith.constant 0 : i32
    %c0_i32_0 = arith.constant 0 : i32
    return %arg0, %c0_i32 : i32, i32
  }
}

</mosaic_0001>

<bundles_post_ra>
// kernel: delta_nn_forward_batched.1
= control target key start
LH: loop header
LB: loop body
LE: loop exit
PB: predicated region body
PF: predicated region fallthrough
CT: control target
= control target key end

     0   :  { %s1405_s24 = smov 0   ;;  %s1623_s0 = inlined_call_operand.vmem [shape: f32[256,17], index: 0, kind: input, shape index: {}]   ;;  %s1624_s1 = inlined_call_operand.vmem [shape: f32[17,64], index: 1, kind: input, shape index: {}]   ;;  %s1625_s2 = inlined_call_operand.vmem [shape: f32[1,64], index: 2, kind: input, shape index: {}]   ;;  %s1626_s3 = inlined_call_operand.vmem [shape: f32[64,32], index: 3, kind: input, shape index: {}]   ;;  %s1627_s4 = inlined_call_operand.vmem [shape: f32[1,32], index: 4, kind: input, shape index: {}]   ;;  %s1628_s5 = inlined_call_operand.vmem [shape: f32[32,16], index: 5, kind: input, shape index: {}]   ;;  %s1629_s6 = inlined_call_operand.vmem [shape: f32[1,16], index: 6, kind: input, shape index: {}]   ;;  %s1630_s7 = inlined_call_operand.vmem [shape: f32[256,16], index: 7, kind: output, shape index: {}]  }
   0x1 LB: > { %s1025_s25 = sadd.s32 4294967295, %s1363_s24   ;;  %p1029_p0 = scmp.ge.s32.totalorder %s1363_s24, 1  ;;  %s1363_s24 = sphi %s1405_s24, %s17_s24  }
   0x2   : > { %p238_p1 = scmp.lt.s32.totalorder %s1363_s24, 3 }
   0x4   : > { %p239_p2 = pnand %p1029_p0, %p238_p1 }
   0x5   : > { %v298_v0 = vld [vmem:[%s1624_s1] sm:$0xff] (!%p239_p2)  ;;  %v299_v1 = vld [vmem:[%s1624_s1 + $0x8] sm:$0xff] (!%p239_p2)  ;;  %s1030_s30 = sshll.u32 (!%p239_p2), %s1025_s25, 4  ;;  %v300_v3 = vld [vmem:[%s1624_s1 + $0x10] sm:$0x1] (!%p239_p2)  ;;  %vm357_vm0 = vcmask (!%p239_p2), 1040384  }
   0x6   : > { %242 = sbr.rel (%p239_p2) target bundleno = 716 (0x2cc), region = 48  ;;  %v1253_v2 = vpack.c.bf16 (!%p239_p2), %v299_v1, %v298_v0  ;;  %p271_p3 = scmp.lt.s32.totalorder (!%p239_p2), %s1030_s30, 31  ;;  %v522_v4 = vld [vmem:[%s1626_s3] sm:$0xff] (!%p239_p2)  ;;  %v523_v5 = vld [vmem:[%s1626_s3 + $0x8] sm:$0xff] (!%p239_p2)  ;;  %vm308_vm1 = vcmask (!%p239_p2), 138240   ;;  %v524_v23 = vld [vmem:[%s1626_s3 + $0x10] sm:$0xff] (!%p239_p2) }
   0x7   : > { %v1257_v9 = vpack.c.bf16 (!%p239_p2), %v523_v5, %v522_v4  ;;  %v525_v24 = vld [vmem:[%s1626_s3 + $0x18] sm:$0xff] (!%p239_p2)  ;;  %v526_v26 = vld [vmem:[%s1626_s3 + $0x20] sm:$0xff] (!%p239_p2)  ;;  %v527_v27 = vld [vmem:[%s1626_s3 + $0x28] sm:$0xff] (!%p239_p2)  ;;  %vm537_vm2 = vcmask (!%p239_p2), 523264   ;;  %vm758_vm3 = vcmask (!%p239_p2), 261120   ;;  %vm952_vm4 = vcmask (!%p239_p2), 130048  }
   0x8   : > { %1254 = vmatprep.subr.bf16.mxu0 (!%p239_p2), %v1253_v2  ;;  %1281 = vmatprep.subr.bf16.mxu1 (!%p239_p2), %v1253_v2  ;;  %v1261_v25 = vpack.c.bf16 (!%p239_p2), %v525_v24, %v524_v23  ;;  %v1265_v28 = vpack.c.bf16 (!%p239_p2), %v527_v27, %v526_v26  ;;  %v528_v29 = vld [vmem:[%s1626_s3 + $0x30] sm:$0xff] (!%p239_p2)  ;;  %v529_v30 = vld [vmem:[%s1626_s3 + $0x38] sm:$0xff] (!%p239_p2)  ;;  %v747_v32 = vld [vmem:[%s1628_s5] sm:$0xff] (!%p239_p2) }
   0x9   : > { %1256 = vmatpush3.bf16.msra.mxu0 (!%p239_p2), %v1253_v2  ;;  %1283 = vmatpush3.bf16.msra.mxu1 (!%p239_p2), %v1253_v2  ;;  %v1269_v31 = vpack.c.bf16 (!%p239_p2), %v529_v30, %v528_v29  ;;  %v748_v33 = vld [vmem:[%s1628_s5 + $0x8] sm:$0xff] (!%p239_p2)  ;;  %v1501_v35 = vld [vmem:[%s1625_s2] ss:$0 sm:$0xff] (!%p239_p2) }
   0xa   : > { %1155 = vmatprep.subr.msk.mxu0 (!%p239_p2), %vm357_vm0, %v300_v3  ;;  %1282 = vmatprep.subr.msk.mxu1 (!%p239_p2), %vm357_vm0, %v300_v3  ;;  %v1273_v34 = vpack.c.bf16 (!%p239_p2), %v748_v33, %v747_v32  ;;  %v1544_v23 = vld [vmem:[%s1627_s4] ss:$0 sm:$0xff] (!%p239_p2) }
   0xd   : > { %s1632_s30 = smov (!%p271_p3, %s1030_s30), 31  ;;  %1156 = vmatpush3.msk.msra.mxu0 %vm357_vm0, %v300_v3  ;;  %1284 = vmatpush3.msk.msra.mxu1 %vm357_vm0, %v300_v3 }
   0xe   : > { %s1031_s14 = sshll.u32 %s1632_s30, 3  ;;  %1258 = vmatprep.subr.bf16.mxu1 %v1257_v9  ;;  %1274 = vmatprep.subr.bf16.mxu0 %v1273_v34 }
   0xf   : > { %s1438_s17 = scalar_lea.vmem %s1623_s0, %s1031_s14  ;;  %s1586_s27 = scalar_lea.vmem %s1630_s7, %s1031_s14 }
  0x10   : > { %v282_v6 = vld [vmem:[%s1438_s17] sm:$0xff]  ;;  %v283_v7 = vld [vmem:[%s1438_s17 + $0x8] sm:$0xff]  ;;  %v284_v8 = vld [vmem:[%s1438_s17 + $0x10] sm:$0xff] }
  0x11   : > { %1157 = vmatprep.mubr.msk.f32.mxu0 %vm308_vm1, %v282_v6  ;;  %v290_v10 = vld [vmem:[%s1438_s17 + $0x40] sm:$0xff]  ;;  %v285_v11 = vld [vmem:[%s1438_s17 + $0x18] sm:$0xff]  ;;  %v291_v12 = vld [vmem:[%s1438_s17 + $0x48] sm:$0xff] }
  0x12   : > { %1158 = vmatmul.mubr.msk.f32.vlgmr.msra.gmra.mrb[0].mxu0 %vm308_vm1, %v283_v7  ;;  %1169 = vmatprep.mubr.msk.f32.mxu1 %vm308_vm1, %v290_v10  ;;  %v292_v13 = vld [vmem:[%s1438_s17 + $0x50] sm:$0xff]  ;;  %v286_v14 = vld [vmem:[%s1438_s17 + $0x20] sm:$0xff]  ;;  %v293_v15 = vld [vmem:[%s1438_s17 + $0x58] sm:$0xff] }
  0x13   : > { %1160 = vmatprep.mubr.msk.f32.mxu0 %vm308_vm1, %v284_v8  ;;  %1170 = vmatmul.mubr.msk.f32.vlgmr.msra.gmra.mrb[0].mxu1 %vm308_vm1, %v291_v12  ;;  %v294_v16 = vld [vmem:[%s1438_s17 + $0x60] sm:$0xff]  ;;  %v287_v17 = vld [vmem:[%s1438_s17 + $0x28] sm:$0xff]  ;;  %v288_v18 = vld [vmem:[%s1438_s17 + $0x30] sm:$0xff] }
  0x14   : > { %1172 = vmatprep.mubr.msk.f32.mxu1 %vm308_vm1, %v292_v13  ;;  %1260 = vmatpush3.bf16.msra.mxu1 %v1257_v9  ;;  %v295_v19 = vld [vmem:[%s1438_s17 + $0x68] sm:$0xff]  ;;  %v296_v20 = vld [vmem:[%s1438_s17 + $0x70] sm:$0xff]  ;;  %v289_v21 = vld [vmem:[%s1438_s17 + $0x38] sm:$0xff] }
  0x15   : > { %v297_v22 = vld [vmem:[%s1438_s17 + $0x78] sm:$0xff]  ;;  %1262 = vmatprep.subr.bf16.mxu1 %v1261_v25  ;;  %1276 = vmatpush3.bf16.msra.mxu0 %v1273_v34 }
  0x16   : > { %1161 = vmatmul.mubr.msk.f32.gmra.mrb[2].mxu0 %vm308_vm1, %v285_v11 }
  0x17   : > { %1163 = vmatprep.mubr.msk.f32.mxu0 %vm308_vm1, %v286_v14  ;;  %1173 = vmatmul.mubr.msk.f32.gmra.mrb[2].mxu1 %vm308_vm1, %v293_v15 }
  0x18   : > { %1175 = vmatprep.mubr.msk.f32.mxu1 %vm308_vm1, %v294_v16  ;;  %1264 = vmatpush3.bf16.msra.mxu1 %v1261_v25 }
  0x19   : > { %1266 = vmatprep.subr.bf16.mxu1 %v1265_v28 }
  0x1a   : > { %1164 = vmatmul.mubr.msk.f32.gmra.mrb[4].mxu0 %vm308_vm1, %v287_v17 }
  0x1b   : > { %1166 = vmatprep.mubr.msk.f32.mxu0 %vm308_vm1, %v288_v18  ;;  %1176 = vmatmul.mubr.msk.f32.gmra.mrb[4].mxu1 %vm308_vm1, %v295_v19 }
  0x1c   : > { %1178 = vmatprep.mubr.msk.f32.mxu1 %vm308_vm1, %v296_v20  ;;  %1268 = vmatpush3.bf16.msra.mxu1 %v1265_v28  ;;  %v749_v20 = vld [vmem:[%s1628_s5 + $0x10] sm:$0xff] }
  0x1d   : > { %1270 = vmatprep.subr.bf16.mxu1 %v1269_v31 }
  0x1e   : > { %1167 = vmatmul.mubr.msk.f32.gmra.mrb[6].mxu0 %vm308_vm1, %v289_v21  ;;  %v750_v21 = vld [vmem:[%s1628_s5 + $0x18] sm:$0xff] }
  0x1f   : > { %1179 = vmatmul.mubr.msk.f32.gmra.mrb[6].mxu1 %vm308_vm1, %v297_v22  ;;  %v1277_v22 = vpack.c.bf16 %v750_v21, %v749_v20 }
  0x20   : > { %1272 = vmatpush3.bf16.msra.mxu1 %v1269_v31 }
  0x21   : > { %1278 = vmatprep.subr.bf16.mxu0 %v1277_v22 }
  0x22   : > { %1280 = vmatpush3.bf16.msra.mxu0 %v1277_v22 }
  0xe5   : > { %v1159_v36 = vpop.f32.mrb[0].mxu0 }
  0xe6   : > { %v433_v37 = vadd.f32 %v1159_v36, %v1501_v35  ;;  %v427_v38 = vpop.f32.mrb[1].mxu0  ;;  %v1171_v40 = vpop.f32.mrb[0].mxu1 }
  0xe7   : > { %v428_v39 = vadd.f32 %v1501_v35, %v427_v38  ;;  %v467_v41 = vpop.f32.mrb[1].mxu1  ;;  %v473_v0 = vadd.f32 %v1171_v40, %v1501_v35 }
  0xe8   : > { %v468_v53 = vadd.f32 %v1501_v35, %v467_v41 }
  0xe9   : > { %1293 = vtanh.f32 %v428_v39  ;;  %v1162_v42 = vpop.f32.mrb[2].mxu0 }
  0xea   : > { %1295 = vtanh.f32 %v433_v37  ;;  %v443_v43 = vadd.f32 %v1162_v42, %v1501_v35  ;;  %v437_v44 = vpop.f32.mrb[3].mxu0  ;;  %v1174_v46 = vpop.f32.mrb[2].mxu1 }
  0xeb   : > { %v438_v45 = vadd.f32 %v1501_v35, %v437_v44  ;;  %v477_v47 = vpop.f32.mrb[3].mxu1  ;;  %v483_v4 = vadd.f32 %v1174_v46, %v1501_v35 }
  0xec   : > { %v478_v63 = vadd.f32 %v1501_v35, %v477_v47 }
  0xed   : > { %1297 = vtanh.f32 %v438_v45  ;;  %v1165_v48 = vpop.f32.mrb[4].mxu0 }
  0xee   : > { %1299 = vtanh.f32 %v443_v43  ;;  %v453_v49 = vadd.f32 %v1165_v48, %v1501_v35  ;;  %v447_v50 = vpop.f32.mrb[5].mxu0  ;;  %v1177_v52 = vpop.f32.mrb[4].mxu1 }
  0xef   : > { %v448_v51 = vadd.f32 %v1501_v35, %v447_v50  ;;  %v487_v54 = vpop.f32.mrb[5].mxu1  ;;  %v493_v9 = vadd.f32 %v1177_v52, %v1501_v35 }
  0xf0   : > { %v488_v3 = vadd.f32 %v1501_v35, %v487_v54 }
  0xf1   : > { %1301 = vtanh.f32 %v448_v51  ;;  %v1168_v55 = vpop.f32.mrb[6].mxu0 }
  0xf2   : > { %1303 = vtanh.f32 %v453_v49  ;;  %v463_v56 = vadd.f32 %v1168_v55, %v1501_v35  ;;  %v457_v57 = vpop.f32.mrb[7].mxu0  ;;  %v1180_v60 = vpop.f32.mrb[6].mxu1 }
  0xf3   : > { %v1294_v58 = vpop.eup %1293  ;;  %v458_v59 = vadd.f32 %v1501_v35, %v457_v57  ;;  %1305 = vtanh.f32 %v468_v53  ;;  %v497_v62 = vpop.f32.mrb[7].mxu1  ;;  %v503_v12 = vadd.f32 %v1180_v60, %v1501_v35 }
  0xf4   : > { %v1296_v61 = vpop.eup %1295  ;;  %1197 = vmatprep.mubr.msk.f32.mxu1 %vm537_vm2, %v1294_v58  ;;  %v498_v7 = vadd.f32 %v1501_v35, %v497_v62 }
  0xf5   : > { %1307 = vtanh.f32 %v458_v59  ;;  %1198 = vmatmul.mubr.msk.f32.vlgmr.msra.gmra.mrb[8].mxu1 %vm537_vm2, %v1296_v61 }
  0xf6   : > { %1309 = vtanh.f32 %v463_v56 }
  0xf7   : > { %v1298_v1 = vpop.eup %1297  ;;  %1311 = vtanh.f32 %v478_v63 }
  0xf8   : > { %v1300_v2 = vpop.eup %1299  ;;  %1200 = vmatprep.mubr.msk.f32.mxu1 %vm537_vm2, %v1298_v1  ;;  %1313 = vtanh.f32 %v473_v0 }
  0xf9   : > { %1201 = vmatmul.mubr.msk.f32.gmra.mrb[10].mxu1 %vm537_vm2, %v1300_v2  ;;  %1315 = vtanh.f32 %v488_v3 }
  0xfa   : > { %1317 = vtanh.f32 %v483_v4 }
  0xfb   : > { %v1302_v5 = vpop.eup %1301  ;;  %1319 = vtanh.f32 %v498_v7 }
  0xfc   : > { %v1304_v6 = vpop.eup %1303  ;;  %1203 = vmatprep.mubr.msk.f32.mxu1 %vm537_vm2, %v1302_v5  ;;  %1321 = vtanh.f32 %v493_v9 }
  0xfd   : > { %1204 = vmatmul.mubr.msk.f32.gmra.mrb[12].mxu1 %vm537_vm2, %v1304_v6  ;;  %v1306_v8 = vpop.eup %1305  ;;  %1323 = vtanh.f32 %v503_v12 }
  0xff   : > { %v1308_v10 = vpop.eup %1307 }
 0x100   : > { %v1310_v11 = vpop.eup %1309  ;;  %1206 = vmatprep.mubr.msk.f32.mxu1 %vm537_vm2, %v1308_v10 }
 0x101   : > { %1207 = vmatmul.mubr.msk.f32.gmra.mrb[14].mxu1 %vm537_vm2, %v1310_v11  ;;  %v1312_v13 = vpop.eup %1311 }
 0x102   : > { %1209 = vmatprep.mubr.msk.f32.mxu1 %vm537_vm2, %v1306_v8  ;;  %v1314_v14 = vpop.eup %1313  ;;  %v1069_v8 = vld [vmem:[%s1629_s6] ss:$0 sm:$0xff] }
 0x103   : > { %v1316_v15 = vpop.eup %1315 }
 0x104   : > { %v1318_v16 = vpop.eup %1317 }
 0x105   : > { %1210 = vmatmul.mubr.msk.f32.gmra.mrb[16].mxu1 %vm537_vm2, %v1314_v14  ;;  %v1320_v17 = vpop.eup %1319 }
 0x106   : > { %1212 = vmatprep.mubr.msk.f32.mxu1 %vm537_vm2, %v1312_v13  ;;  %v1322_v18 = vpop.eup %1321 }
 0x107   : > { %v1324_v19 = vpop.eup %1323 }
 0x109   : > { %1213 = vmatmul.mubr.msk.f32.gmra.mrb[18].mxu1 %vm537_vm2, %v1318_v16 }
 0x10a   : > { %1215 = vmatprep.mubr.msk.f32.mxu1 %vm537_vm2, %v1316_v15 }
 0x10d   : > { %1216 = vmatmul.mubr.msk.f32.gmra.mrb[20].mxu1 %vm537_vm2, %v1322_v18 }
 0x10e   : > { %1218 = vmatprep.mubr.msk.f32.mxu1 %vm537_vm2, %v1320_v17 }
 0x111   : > { %1219 = vmatmul.mubr.msk.f32.gmra.mrb[22].mxu1 %vm537_vm2, %v1324_v19 }
 0x1c8   : > { %v1199_v24 = vpop.f32.mrb[8].mxu1 }
 0x1c9   : > { %v658_v25 = vadd.f32 %v1199_v24, %v1544_v23  ;;  %v652_v26 = vpop.f32.mrb[9].mxu1 }
 0x1ca   : > { %v653_v27 = vadd.f32 %v1544_v23, %v652_v26 }
 0x1cc   : > { %1325 = vtanh.f32 %v653_v27  ;;  %v1202_v28 = vpop.f32.mrb[10].mxu1 }
 0x1cd   : > { %1327 = vtanh.f32 %v658_v25  ;;  %v668_v29 = vadd.f32 %v1202_v28, %v1544_v23  ;;  %v662_v30 = vpop.f32.mrb[11].mxu1 }
 0x1ce   : > { %v663_v31 = vadd.f32 %v1544_v23, %v662_v30 }
 0x1d0   : > { %1329 = vtanh.f32 %v663_v31  ;;  %v1205_v32 = vpop.f32.mrb[12].mxu1 }
 0x1d1   : > { %1331 = vtanh.f32 %v668_v29  ;;  %v678_v33 = vadd.f32 %v1205_v32, %v1544_v23  ;;  %v672_v34 = vpop.f32.mrb[13].mxu1 }
 0x1d2   : > { %v673_v35 = vadd.f32 %v1544_v23, %v672_v34 }
 0x1d4   : > { %1333 = vtanh.f32 %v673_v35  ;;  %v1208_v36 = vpop.f32.mrb[14].mxu1 }
 0x1d5   : > { %1335 = vtanh.f32 %v678_v33  ;;  %v688_v37 = vadd.f32 %v1208_v36, %v1544_v23  ;;  %v682_v38 = vpop.f32.mrb[15].mxu1 }
 0x1d6   : > { %v1326_v39 = vpop.eup %1325  ;;  %v683_v40 = vadd.f32 %v1544_v23, %v682_v38 }
 0x1d7   : > { %v1328_v41 = vpop.eup %1327  ;;  %1229 = vmatprep.mubr.msk.f32.mxu0 %vm758_vm3, %v1326_v39 }
 0x1d8   : > { %1337 = vtanh.f32 %v683_v40  ;;  %v1211_v42 = vpop.f32.mrb[16].mxu1  ;;  %1230 = vmatmul.mubr.msk.f32.vlgmr.msra.gmra.mrb[8].mxu0 %vm758_vm3, %v1328_v41 }
 0x1d9   : > { %1339 = vtanh.f32 %v688_v37  ;;  %v698_v43 = vadd.f32 %v1211_v42, %v1544_v23  ;;  %v692_v44 = vpop.f32.mrb[17].mxu1 }
 0x1da   : > { %v1330_v45 = vpop.eup %1329  ;;  %v693_v46 = vadd.f32 %v1544_v23, %v692_v44 }
 0x1db   : > { %v1332_v47 = vpop.eup %1331  ;;  %1232 = vmatprep.mubr.msk.f32.mxu0 %vm758_vm3, %v1330_v45 }
 0x1dc   : > { %1341 = vtanh.f32 %v693_v46  ;;  %v1214_v48 = vpop.f32.mrb[18].mxu1  ;;  %1233 = vmatmul.mubr.msk.f32.gmra.mrb[10].mxu0 %vm758_vm3, %v1332_v47 }
 0x1dd   : > { %1343 = vtanh.f32 %v698_v43  ;;  %v708_v49 = vadd.f32 %v1214_v48, %v1544_v23  ;;  %v702_v50 = vpop.f32.mrb[19].mxu1 }
 0x1de   : > { %v1334_v51 = vpop.eup %1333  ;;  %v703_v52 = vadd.f32 %v1544_v23, %v702_v50 }
 0x1df   : > { %v1336_v53 = vpop.eup %1335  ;;  %1235 = vmatprep.mubr.msk.f32.mxu0 %vm758_vm3, %v1334_v51 }
 0x1e0   : > { %1345 = vtanh.f32 %v703_v52  ;;  %v1217_v54 = vpop.f32.mrb[20].mxu1  ;;  %1236 = vmatmul.mubr.msk.f32.gmra.mrb[12].mxu0 %vm758_vm3, %v1336_v53 }
 0x1e1   : > { %1347 = vtanh.f32 %v708_v49  ;;  %v718_v55 = vadd.f32 %v1217_v54, %v1544_v23  ;;  %v712_v56 = vpop.f32.mrb[21].mxu1 }
 0x1e2   : > { %v1338_v57 = vpop.eup %1337  ;;  %v713_v58 = vadd.f32 %v1544_v23, %v712_v56 }
 0x1e3   : > { %v1340_v59 = vpop.eup %1339  ;;  %1238 = vmatprep.mubr.msk.f32.mxu0 %vm758_vm3, %v1338_v57 }
 0x1e4   : > { %1349 = vtanh.f32 %v713_v58  ;;  %v1220_v60 = vpop.f32.mrb[22].mxu1  ;;  %1239 = vmatmul.mubr.msk.f32.gmra.mrb[14].mxu0 %vm758_vm3, %v1340_v59 }
 0x1e5   : > { %1351 = vtanh.f32 %v718_v55  ;;  %v728_v61 = vadd.f32 %v1220_v60, %v1544_v23  ;;  %v722_v62 = vpop.f32.mrb[23].mxu1 }
 0x1e6   : > { %v1342_v63 = vpop.eup %1341  ;;  %v723_v0 = vadd.f32 %v1544_v23, %v722_v62 }
 0x1e7   : > { %v1344_v1 = vpop.eup %1343  ;;  %1241 = vmatprep.mubr.msk.f32.mxu0 %vm758_vm3, %v1342_v63 }
 0x1e8   : > { %1353 = vtanh.f32 %v723_v0  ;;  %1242 = vmatmul.mubr.msk.f32.gmra.mrb[16].mxu0 %vm758_vm3, %v1344_v1 }
 0x1e9   : > { %1355 = vtanh.f32 %v728_v61 }
 0x1ea   : > { %v1346_v2 = vpop.eup %1345 }
 0x1eb   : > { %v1348_v3 = vpop.eup %1347  ;;  %1244 = vmatprep.mubr.msk.f32.mxu0 %vm758_vm3, %v1346_v2 }
 0x1ec   : > { %1245 = vmatmul.mubr.msk.f32.gmra.mrb[18].mxu0 %vm758_vm3, %v1348_v3 }
 0x1ee   : > { %v1350_v4 = vpop.eup %1349 }
 0x1ef   : > { %v1352_v5 = vpop.eup %1351  ;;  %1247 = vmatprep.mubr.msk.f32.mxu0 %vm758_vm3, %v1350_v4 }
 0x1f0   : > { %1248 = vmatmul.mubr.msk.f32.gmra.mrb[20].mxu0 %vm758_vm3, %v1352_v5 }
 0x1f2   : > { %v1354_v6 = vpop.eup %1353 }
 0x1f3   : > { %v1356_v7 = vpop.eup %1355  ;;  %1250 = vmatprep.mubr.msk.f32.mxu0 %vm758_vm3, %v1354_v6 }
 0x1f4   : > { %1251 = vmatmul.mubr.msk.f32.gmra.mrb[22].mxu0 %vm758_vm3, %v1356_v7 }
 0x2ab   : > { %v1231_v9 = vpop.f32.mrb[8].mxu0 }
 0x2ac   : > { %v879_v10 = vadd.f32 %v1231_v9, %v1069_v8  ;;  %v873_v11 = vpop.f32.mrb[9].mxu0 }
 0x2ad   : > { %v874_v12 = vadd.f32 %v1069_v8, %v873_v11 }
 0x2ae   : > { %954 = vst.msk [vmem:[%s1586_s27 + $0x8] sm:$0xff] %vm952_vm4, %v879_v10 }
 0x2af   : > { %953 = vst.msk [vmem:[%s1586_s27] sm:$0xff] %vm952_vm4, %v874_v12  ;;  %v1234_v13 = vpop.f32.mrb[10].mxu0 }
 0x2b0   : > { %v889_v14 = vadd.f32 %v1234_v13, %v1069_v8  ;;  %v883_v15 = vpop.f32.mrb[11].mxu0 }
 0x2b1   : > { %v884_v16 = vadd.f32 %v1069_v8, %v883_v15 }
 0x2b2   : > { %956 = vst.msk [vmem:[%s1586_s27 + $0x18] sm:$0xff] %vm952_vm4, %v889_v14 }
 0x2b3   : > { %955 = vst.msk [vmem:[%s1586_s27 + $0x10] sm:$0xff] %vm952_vm4, %v884_v16  ;;  %v1237_v17 = vpop.f32.mrb[12].mxu0 }
 0x2b4   : > { %v899_v18 = vadd.f32 %v1237_v17, %v1069_v8  ;;  %v893_v19 = vpop.f32.mrb[13].mxu0 }
 0x2b5   : > { %v894_v20 = vadd.f32 %v1069_v8, %v893_v19 }
 0x2b6   : > { %958 = vst.msk [vmem:[%s1586_s27 + $0x28] sm:$0xff] %vm952_vm4, %v899_v18 }
 0x2b7   : > { %957 = vst.msk [vmem:[%s1586_s27 + $0x20] sm:$0xff] %vm952_vm4, %v894_v20  ;;  %v1240_v21 = vpop.f32.mrb[14].mxu0 }
 0x2b8   : > { %v909_v22 = vadd.f32 %v1240_v21, %v1069_v8  ;;  %v903_v23 = vpop.f32.mrb[15].mxu0 }
 0x2b9   : > { %v904_v24 = vadd.f32 %v1069_v8, %v903_v23 }
 0x2ba   : > { %960 = vst.msk [vmem:[%s1586_s27 + $0x38] sm:$0xff] %vm952_vm4, %v909_v22 }
 0x2bb   : > { %959 = vst.msk [vmem:[%s1586_s27 + $0x30] sm:$0xff] %vm952_vm4, %v904_v24  ;;  %v1243_v25 = vpop.f32.mrb[16].mxu0 }
 0x2bc   : > { %v919_v26 = vadd.f32 %v1243_v25, %v1069_v8  ;;  %v913_v27 = vpop.f32.mrb[17].mxu0 }
 0x2bd   : > { %v914_v28 = vadd.f32 %v1069_v8, %v913_v27 }
 0x2be   : > { %962 = vst.msk [vmem:[%s1586_s27 + $0x48] sm:$0xff] %vm952_vm4, %v919_v26 }
 0x2bf   : > { %961 = vst.msk [vmem:[%s1586_s27 + $0x40] sm:$0xff] %vm952_vm4, %v914_v28  ;;  %v1246_v29 = vpop.f32.mrb[18].mxu0 }
 0x2c0   : > { %v929_v30 = vadd.f32 %v1246_v29, %v1069_v8  ;;  %v923_v31 = vpop.f32.mrb[19].mxu0 }
 0x2c1   : > { %v924_v32 = vadd.f32 %v1069_v8, %v923_v31 }
 0x2c2   : > { %964 = vst.msk [vmem:[%s1586_s27 + $0x58] sm:$0xff] %vm952_vm4, %v929_v30 }
 0x2c3   : > { %963 = vst.msk [vmem:[%s1586_s27 + $0x50] sm:$0xff] %vm952_vm4, %v924_v32  ;;  %v1249_v33 = vpop.f32.mrb[20].mxu0 }
 0x2c4   : > { %v939_v34 = vadd.f32 %v1249_v33, %v1069_v8  ;;  %v933_v35 = vpop.f32.mrb[21].mxu0 }
 0x2c5   : > { %v934_v36 = vadd.f32 %v1069_v8, %v933_v35 }
 0x2c6   : > { %966 = vst.msk [vmem:[%s1586_s27 + $0x68] sm:$0xff] %vm952_vm4, %v939_v34 }
 0x2c7   : > { %965 = vst.msk [vmem:[%s1586_s27 + $0x60] sm:$0xff] %vm952_vm4, %v934_v36  ;;  %v1252_v37 = vpop.f32.mrb[22].mxu0 }
 0x2c8   : > { %v949_v38 = vadd.f32 %v1252_v37, %v1069_v8  ;;  %v943_v39 = vpop.f32.mrb[23].mxu0 }
 0x2c9   : > { %v944_v40 = vadd.f32 %v1069_v8, %v943_v39 }
 0x2ca   : > { %968 = vst.msk [vmem:[%s1586_s27 + $0x78] sm:$0xff] %vm952_vm4, %v949_v38 }
 0x2cb   : > { %967 = vst.msk [vmem:[%s1586_s27 + $0x70] sm:$0xff] %vm952_vm4, %v944_v40 }
 0x2cc PF: > { %s17_s24 = sadd.s32 1, %s1363_s24  }
 0x2cd   : > { %p14_p4 = scmp.ge.s32.totalorder %s17_s24, 4  }
 0x2cf   :  { %16 = sbr.rel (!%p14_p4) target bundleno = 1 (0x1), region = 78 }

</bundles_post_ra>
